<compile_context>
chip_gen: v6e
topology: v6e:2x2x1
jax: 0.10.0
libtpu: 0.0.40
codegen_flags: <defaults>
</compile_context>

<pallas_src>
from functools import partial

import jax
import jax.numpy as jnp
from jax import lax
from jax.experimental import pallas as pl
from jax.experimental.pallas import tpu as pltpu


# ----------------------------------------------------------------------------
# Kernel A: max/argmax over class dim on logits, sigmoid only on the max row.
#   in : cls logits tile (1, C, TN)
#   out: scores (1, 1, TN) float32, labels (1, 1, TN) int32 (1-based)
# ----------------------------------------------------------------------------
def cls_head_kernel(cls_ref, score_ref, label_ref):
    logits = cls_ref[...]                               # (1, C, TN)
    num_c = logits.shape[1]
    best = logits[:, 0:1, :]                            # (1, 1, TN)
    arg = jnp.zeros(best.shape, dtype=jnp.int32)
    for c in range(1, num_c):                           # static unroll, C is tiny
        lc = logits[:, c:c + 1, :]
        better = lc > best                              # strict > => first index wins
        best = jnp.where(better, lc, best)
        arg = jnp.where(better, c, arg)
    score_ref[...] = jax.nn.sigmoid(best)               # sigmoid(max) == max(sigmoid)
    label_ref[...] = (arg + 1).astype(jnp.int32)        # label_preds = argmax + 1


def cls_scores_labels(cls_preds):
    """cls_preds: (B, N, C) logits -> (scores (B, N), labels (B, N) int32, 1-based)."""
    B, N, C = cls_preds.shape
    cls_cn = jnp.transpose(cls_preds, (0, 2, 1))        # (B, C, N), lane axis = boxes
    TN = 2048 if (N > 2048 and N % 2048 == 0) else N    # lane-dense tile of boxes
    scores, labels = pl.pallas_call(
        cls_head_kernel,
        out_shape=(jax.ShapeDtypeStruct((B, 1, N), jnp.float32),
                   jax.ShapeDtypeStruct((B, 1, N), jnp.int32)),
        grid=(B, N // TN),
        in_specs=[pl.BlockSpec((1, C, TN), lambda b, j: (b, 0, j))],
        out_specs=(pl.BlockSpec((1, 1, TN), lambda b, j: (b, 0, j)),
                   pl.BlockSpec((1, 1, TN), lambda b, j: (b, 0, j))),
        compiler_params=pltpu.CompilerParams(
            dimension_semantics=("parallel", "parallel"),
            vmem_limit_bytes=32 * 1024 * 1024),
    )(cls_cn)
    return scores[:, 0, :], labels[:, 0, :]


# ----------------------------------------------------------------------------
# Kernel B: tiled pairwise BEV overlap decision (axis-aligned).
#   in : row boxes tile (1, TM, 7)  [x, y, z, dx, dy, dz, heading]
#        col boxes tile (1, 7, TN)  (pre-transposed in the wrapper)
#   out: int8 mask tile (1, TM, TN): 1 where IoU > nms_thresh
#  No divide: iou > t  <=>  inter*(1+t) > t*(area_a + area_b).
# ----------------------------------------------------------------------------
def make_overlap_kernel(nms_thresh):
    thr = float(nms_thresh)

    def overlap_kernel(box_ref, boxT_ref, mask_ref):
        b = box_ref[...]            # (1, TM, 7)   row boxes (sublane axis)
        bt = boxT_ref[...]          # (1, 7, TN)   col boxes (lane axis)

        xa, ya = b[:, :, 0:1], b[:, :, 1:2]
        dxa, dya = b[:, :, 3:4], b[:, :, 4:5]
        xb, yb = bt[:, 0:1, :], bt[:, 1:2, :]
        dxb, dyb = bt[:, 3:4, :], bt[:, 4:5, :]

        ax1, ax2 = xa - 0.5 * dxa, xa + 0.5 * dxa
        ay1, ay2 = ya - 0.5 * dya, ya + 0.5 * dya
        bx1, bx2 = xb - 0.5 * dxb, xb + 0.5 * dxb
        by1, by2 = yb - 0.5 * dyb, yb + 0.5 * dyb

        iw = jnp.maximum(jnp.minimum(ax2, bx2) - jnp.maximum(ax1, bx1), 0.0)
        ih = jnp.maximum(jnp.minimum(ay2, by2) - jnp.maximum(ay1, by1), 0.0)
        inter = iw * ih                              # (1, TM, TN)
        area_a = dxa * dya                           # (1, TM, 1)
        area_b = dxb * dyb                           # (1, 1, TN)
        overlap = inter * (1.0 + thr) > thr * (area_a + area_b)
        mask_ref[...] = overlap.astype(jnp.int8)

    return overlap_kernel


def pairwise_overlap_mask(box_preds, nms_thresh):
    """box_preds: (B, N, 7) (already score-sorted) -> int8 mask (B, N, N)."""
    B, N, D = box_preds.shape
    boxesT = jnp.transpose(box_preds, (0, 2, 1))     # (B, 7, N)
    TM = 256 if (N > 256 and N % 256 == 0) else N    # sublane tile (mult of 32 for int8)
    TN = 1024 if (N > 1024 and N % 1024 == 0) else N  # lane-dense tile (mult of 128)
    mask = pl.pallas_call(
        make_overlap_kernel(nms_thresh),
        out_shape=jax.ShapeDtypeStruct((B, N, N), jnp.int8),
        grid=(B, N // TM, N // TN),
        in_specs=[pl.BlockSpec((1, TM, D), lambda b, i, j: (b, i, 0)),
                  pl.BlockSpec((1, D, TN), lambda b, i, j: (b, 0, j))],
        out_specs=pl.BlockSpec((1, TM, TN), lambda b, i, j: (b, i, j)),
        compiler_params=pltpu.CompilerParams(
            dimension_semantics=("parallel", "parallel", "parallel"),
            vmem_limit_bytes=32 * 1024 * 1024),
    )(box_preds, boxesT)
    return mask


# ----------------------------------------------------------------------------
# Greedy class-agnostic suppression on already-sorted data (vmapped over batch).
# TODO(synk): the greedy loop is inherently sequential / data-dependent; it is
# kept as an XLA lax.fori_loop over rows of the precomputed overlap mask.
# ----------------------------------------------------------------------------
def greedy_select(mask, valid, scores, labels, boxes, post_max):
    N = valid.shape[0]
    idxs = jnp.arange(N)

    def body(i, keep):
        row = lax.dynamic_slice_in_dim(mask, i, 1, axis=0)[0]       # (N,) int8
        suppress = keep[i] & (row > 0) & (idxs > i)
        return keep & jnp.logical_not(suppress)

    keep = lax.fori_loop(0, N, body, valid)

    num_sel = jnp.minimum(jnp.sum(keep.astype(jnp.int32)), post_max)
    sel_pos = jnp.argsort(jnp.where(keep, 0, 1))[:post_max]         # stable: kept first
    sel_valid = jnp.arange(post_max) < num_sel

    final_boxes = jnp.where(sel_valid[:, None], boxes[sel_pos], 0.0)
    final_scores = jnp.where(sel_valid, scores[sel_pos], 0.0)
    final_labels = jnp.where(sel_valid, labels[sel_pos], 0)
    return final_boxes, final_scores, final_labels


@partial(jax.jit, static_argnames=("score_thresh", "nms_thresh", "post_max"))
def _post_process_batch(batch_cls_preds, batch_box_preds,
                        score_thresh, nms_thresh, post_max):
    # 1) scores / labels (Pallas kernel A)
    scores, labels = cls_scores_labels(batch_cls_preds)             # (B, N), (B, N)

    # 2) sort every batch element by descending score (invalid boxes last)
    valid = scores > score_thresh
    order = jnp.argsort(-jnp.where(valid, scores, -jnp.inf), axis=-1)
    s_scores = jnp.take_along_axis(scores, order, axis=-1)
    s_labels = jnp.take_along_axis(labels, order, axis=-1)
    s_valid = jnp.take_along_axis(valid, order, axis=-1)
    s_boxes = jnp.take_along_axis(batch_box_preds, order[:, :, None], axis=1)

    # 3) overlap decision mask on sorted boxes (Pallas kernel B)
    mask = pairwise_overlap_mask(s_boxes, nms_thresh)               # (B, N, N) int8

    # 4) greedy suppression, vmapped over batch
    fb, fs, fl = jax.vmap(
        lambda m, v, s, l, b: greedy_select(m, v, s, l, b, post_max)
    )(mask, s_valid, s_scores, s_labels, s_boxes)
    return fb, fs, fl


def post_processing(batch_cls_preds, batch_box_preds,
                    score_thresh=0.1, nms_thresh=0.7, post_max=16):
    """JAX/Pallas equivalent of Detector3DTemplate.post_processing for the
    single-head, non-multi-class-NMS path with cls_preds_normalized=False
    and no gt_boxes (recall_dict stays empty, as in the reference)."""
    B = batch_cls_preds.shape[0]
    fb, fs, fl = _post_process_batch(batch_cls_preds, batch_box_preds,
                                     score_thresh, nms_thresh, post_max)
    pred_dicts = [{'pred_boxes': fb[i], 'pred_scores': fs[i], 'pred_labels': fl[i]}
                  for i in range(B)]
    recall_dict = {}  # no 'gt_boxes' in batch_dict -> generate_recall_record is a no-op
    return pred_dicts, recall_dict


# ----------------------------------------------------------------------------
if __name__ == "__main__":
    key = jax.random.PRNGKey(0)
    B, N, NUM_CLASS = 2, 128, 3

    # buffer from __init__: global_step = LongTensor(1).zero_()
    global_step = jnp.zeros(
        (1,), dtype=jnp.int64 if jax.config.jax_enable_x64 else jnp.int32)

    k1, k2, k3, k4 = jax.random.split(key, 4)
    batch_cls_preds = jax.random.normal(k1, (B, N, NUM_CLASS), dtype=jnp.float32)
    centers = jax.random.uniform(k2, (B, N, 3), minval=0.0, maxval=50.0)
    sizes = jax.random.uniform(k3, (B, N, 3), minval=1.0, maxval=4.0)
    heading = jax.random.uniform(k4, (B, N, 1), minval=-3.14, maxval=3.14)
    batch_box_preds = jnp.concatenate([centers, sizes, heading], axis=-1)  # (B, N, 7)

    pred_dicts, recall_dict = post_processing(batch_cls_preds, batch_box_preds)
    for pd in pred_dicts:
        jax.block_until_ready(pd['pred_boxes'])
        jax.block_until_ready(pd['pred_scores'])
        jax.block_until_ready(pd['pred_labels'])

    # update_global_step()
    global_step = global_step + 1
    jax.block_until_ready(global_step)

    print("KERNEL_OK")
</pallas_src>

<mosaic_0001>
module attributes {stable_mosaic.version = 11 : i64} {
  func.func @cls_head_kernel(%arg0: i32, %arg1: i32, %arg2: memref<1x3x128xf32, #tpu.memory_space<vmem>>, %arg3: memref<1x1x128xf32, #tpu.memory_space<vmem>>, %arg4: memref<1x1x128xi32, #tpu.memory_space<vmem>>) attributes {dimension_semantics = [#tpu.dimension_semantics<parallel>, #tpu.dimension_semantics<parallel>], iteration_bounds = array<i64: 2, 1>, scalar_prefetch = 0 : i64, scratch_operands = 0 : i64, tpu.core_type = #tpu.core_type<tc>, window_params = [{transform_indices = @transform_0, window_bounds = array<i64: 1, 3, 128>}, {transform_indices = @transform_1, window_bounds = array<i64: 1, 1, 128>}, {transform_indices = @transform_2, window_bounds = array<i64: 1, 1, 128>}]} {
    %c0 = arith.constant 0 : index
    %c0_0 = arith.constant 0 : index
    %c0_1 = arith.constant 0 : index
    %0 = vector.load %arg2[%c0, %c0_0, %c0_1] : memref<1x3x128xf32, #tpu.memory_space<vmem>>, vector<1x3x128xf32>
    %1 = vector.extract_strided_slice %0 {offsets = [0, 0, 0], sizes = [1, 1, 128], strides = [1, 1, 1]} : vector<1x3x128xf32> to vector<1x1x128xf32>
    %c0_i32 = arith.constant 0 : i32
    %2 = vector.broadcast %c0_i32 : i32 to vector<1x1x128xi32>
    %3 = vector.extract_strided_slice %0 {offsets = [0, 1, 0], sizes = [1, 1, 128], strides = [1, 1, 1]} : vector<1x3x128xf32> to vector<1x1x128xf32>
    %4 = arith.cmpf ogt, %3, %1 : vector<1x1x128xf32>
    %5 = arith.select %4, %3, %1 : vector<1x1x128xi1>, vector<1x1x128xf32>
    %c1_i32 = arith.constant 1 : i32
    %6 = vector.broadcast %c1_i32 : i32 to vector<1x1x128xi32>
    %7 = arith.select %4, %6, %2 : vector<1x1x128xi1>, vector<1x1x128xi32>
    %8 = vector.extract_strided_slice %0 {offsets = [0, 2, 0], sizes = [1, 1, 128], strides = [1, 1, 1]} : vector<1x3x128xf32> to vector<1x1x128xf32>
    %9 = arith.cmpf ogt, %8, %5 : vector<1x1x128xf32>
    %10 = arith.select %9, %8, %5 : vector<1x1x128xi1>, vector<1x1x128xf32>
    %c2_i32 = arith.constant 2 : i32
    %11 = vector.broadcast %c2_i32 : i32 to vector<1x1x128xi32>
    %12 = arith.select %9, %11, %7 : vector<1x1x128xi1>, vector<1x1x128xi32>
    %13 = arith.negf %10 : vector<1x1x128xf32>
    %14 = math.exp %13 : vector<1x1x128xf32>
    %cst = arith.constant 1.000000e+00 : f32
    %15 = vector.broadcast %cst : f32 to vector<1x1x128xf32>
    %16 = arith.addf %15, %14 : vector<1x1x128xf32>
    %17 = arith.divf %15, %16 : vector<1x1x128xf32>
    %c0_2 = arith.constant 0 : index
    %c0_3 = arith.constant 0 : index
    %c0_4 = arith.constant 0 : index
    %18 = vector.load %arg3[%c0_2, %c0_3, %c0_4] : memref<1x1x128xf32, #tpu.memory_space<vmem>>, vector<1x1x128xf32>
    tpu.vector_store %arg3[%c0_2, %c0_3, %c0_4], %17 {strides = array<i32>} : memref<1x1x128xf32, #tpu.memory_space<vmem>>, vector<1x1x128xf32>,
    %c1_i32_5 = arith.constant 1 : i32
    %19 = vector.broadcast %c1_i32_5 : i32 to vector<1x1x128xi32>
    %20 = arith.addi %12, %19 : vector<1x1x128xi32>
    %c0_6 = arith.constant 0 : index
    %c0_7 = arith.constant 0 : index
    %c0_8 = arith.constant 0 : index
    %21 = vector.load %arg4[%c0_6, %c0_7, %c0_8] : memref<1x1x128xi32, #tpu.memory_space<vmem>>, vector<1x1x128xi32>
    tpu.vector_store %arg4[%c0_6, %c0_7, %c0_8], %20 {strides = array<i32>} : memref<1x1x128xi32, #tpu.memory_space<vmem>>, vector<1x1x128xi32>,
    return
  }
  func.func @transform_0(%arg0: i32, %arg1: i32) -> (i32, i32, i32) {
    %c0_i32 = arith.constant 0 : i32
    %c0_i32_0 = arith.constant 0 : i32
    return %arg0, %c0_i32, %arg1 : i32, i32, i32
  }
  func.func @transform_1(%arg0: i32, %arg1: i32) -> (i32, i32, i32) {
    %c0_i32 = arith.constant 0 : i32
    %c0_i32_0 = arith.constant 0 : i32
    return %arg0, %c0_i32, %arg1 : i32, i32, i32
  }
  func.func @transform_2(%arg0: i32, %arg1: i32) -> (i32, i32, i32) {
    %c0_i32 = arith.constant 0 : i32
    %c0_i32_0 = arith.constant 0 : i32
    return %arg0, %c0_i32, %arg1 : i32, i32, i32
  }
}

module attributes {stable_mosaic.version = 11 : i64} {
  func.func @overlap_kernel(%arg0: i32, %arg1: i32, %arg2: i32, %arg3: memref<1x128x7xf32, #tpu.memory_space<vmem>>, %arg4: memref<1x7x128xf32, #tpu.memory_space<vmem>>, %arg5: memref<1x128x128xi8, #tpu.memory_space<vmem>>) attributes {dimension_semantics = [#tpu.dimension_semantics<parallel>, #tpu.dimension_semantics<parallel>, #tpu.dimension_semantics<parallel>], iteration_bounds = array<i64: 2, 1, 1>, scalar_prefetch = 0 : i64, scratch_operands = 0 : i64, tpu.core_type = #tpu.core_type<tc>, window_params = [{transform_indices = @transform_0, window_bounds = array<i64: 1, 128, 7>}, {transform_indices = @transform_1, window_bounds = array<i64: 1, 7, 128>}, {transform_indices = @transform_2, window_bounds = array<i64: 1, 128, 128>}]} {
    %c0 = arith.constant 0 : index
    %c0_0 = arith.constant 0 : index
    %c0_1 = arith.constant 0 : index
    %0 = vector.load %arg3[%c0, %c0_0, %c0_1] : memref<1x128x7xf32, #tpu.memory_space<vmem>>, vector<1x128x7xf32>
    %c0_2 = arith.constant 0 : index
    %c0_3 = arith.constant 0 : index
    %c0_4 = arith.constant 0 : index
    %1 = vector.load %arg4[%c0_2, %c0_3, %c0_4] : memref<1x7x128xf32, #tpu.memory_space<vmem>>, vector<1x7x128xf32>
    %2 = vector.extract_strided_slice %0 {offsets = [0, 0, 0], sizes = [1, 128, 1], strides = [1, 1, 1]} : vector<1x128x7xf32> to vector<1x128x1xf32>
    %3 = vector.extract_strided_slice %0 {offsets = [0, 0, 1], sizes = [1, 128, 1], strides = [1, 1, 1]} : vector<1x128x7xf32> to vector<1x128x1xf32>
    %4 = vector.extract_strided_slice %0 {offsets = [0, 0, 3], sizes = [1, 128, 1], strides = [1, 1, 1]} : vector<1x128x7xf32> to vector<1x128x1xf32>
    %5 = vector.extract_strided_slice %0 {offsets = [0, 0, 4], sizes = [1, 128, 1], strides = [1, 1, 1]} : vector<1x128x7xf32> to vector<1x128x1xf32>
    %6 = vector.extract_strided_slice %1 {offsets = [0, 0, 0], sizes = [1, 1, 128], strides = [1, 1, 1]} : vector<1x7x128xf32> to vector<1x1x128xf32>
    %7 = vector.extract_strided_slice %1 {offsets = [0, 1, 0], sizes = [1, 1, 128], strides = [1, 1, 1]} : vector<1x7x128xf32> to vector<1x1x128xf32>
    %8 = vector.extract_strided_slice %1 {offsets = [0, 3, 0], sizes = [1, 1, 128], strides = [1, 1, 1]} : vector<1x7x128xf32> to vector<1x1x128xf32>
    %9 = vector.extract_strided_slice %1 {offsets = [0, 4, 0], sizes = [1, 1, 128], strides = [1, 1, 1]} : vector<1x7x128xf32> to vector<1x1x128xf32>
    %cst = arith.constant 5.000000e-01 : f32
    %10 = vector.broadcast %cst : f32 to vector<1x128x1xf32>
    %11 = arith.mulf %10, %4 : vector<1x128x1xf32>
    %12 = arith.subf %2, %11 : vector<1x128x1xf32>
    %cst_5 = arith.constant 5.000000e-01 : f32
    %13 = vector.broadcast %cst_5 : f32 to vector<1x128x1xf32>
    %14 = arith.mulf %13, %4 : vector<1x128x1xf32>
    %15 = arith.addf %2, %14 : vector<1x128x1xf32>
    %cst_6 = arith.constant 5.000000e-01 : f32
    %16 = vector.broadcast %cst_6 : f32 to vector<1x128x1xf32>
    %17 = arith.mulf %16, %5 : vector<1x128x1xf32>
    %18 = arith.subf %3, %17 : vector<1x128x1xf32>
    %cst_7 = arith.constant 5.000000e-01 : f32
    %19 = vector.broadcast %cst_7 : f32 to vector<1x128x1xf32>
    %20 = arith.mulf %19, %5 : vector<1x128x1xf32>
    %21 = arith.addf %3, %20 : vector<1x128x1xf32>
    %cst_8 = arith.constant 5.000000e-01 : f32
    %22 = vector.broadcast %cst_8 : f32 to vector<1x1x128xf32>
    %23 = arith.mulf %22, %8 : vector<1x1x128xf32>
    %24 = arith.subf %6, %23 : vector<1x1x128xf32>
    %cst_9 = arith.constant 5.000000e-01 : f32
    %25 = vector.broadcast %cst_9 : f32 to vector<1x1x128xf32>
    %26 = arith.mulf %25, %8 : vector<1x1x128xf32>
    %27 = arith.addf %6, %26 : vector<1x1x128xf32>
    %cst_10 = arith.constant 5.000000e-01 : f32
    %28 = vector.broadcast %cst_10 : f32 to vector<1x1x128xf32>
    %29 = arith.mulf %28, %9 : vector<1x1x128xf32>
    %30 = arith.subf %7, %29 : vector<1x1x128xf32>
    %cst_11 = arith.constant 5.000000e-01 : f32
    %31 = vector.broadcast %cst_11 : f32 to vector<1x1x128xf32>
    %32 = arith.mulf %31, %9 : vector<1x1x128xf32>
    %33 = arith.addf %7, %32 : vector<1x1x128xf32>
    %34 = vector.broadcast %15 : vector<1x128x1xf32> to vector<1x128x128xf32>
    %35 = vector.broadcast %27 : vector<1x1x128xf32> to vector<1x128x128xf32>
    %36 = arith.minimumf %34, %35 : vector<1x128x128xf32>
    %37 = vector.broadcast %12 : vector<1x128x1xf32> to vector<1x128x128xf32>
    %38 = vector.broadcast %24 : vector<1x1x128xf32> to vector<1x128x128xf32>
    %39 = arith.maximumf %37, %38 : vector<1x128x128xf32>
    %40 = arith.subf %36, %39 : vector<1x128x128xf32>
    %cst_12 = arith.constant 0.000000e+00 : f32
    %41 = vector.broadcast %cst_12 : f32 to vector<1x128x128xf32>
    %42 = arith.maximumf %40, %41 : vector<1x128x128xf32>
    %43 = vector.broadcast %21 : vector<1x128x1xf32> to vector<1x128x128xf32>
    %44 = vector.broadcast %33 : vector<1x1x128xf32> to vector<1x128x128xf32>
    %45 = arith.minimumf %43, %44 : vector<1x128x128xf32>
    %46 = vector.broadcast %18 : vector<1x128x1xf32> to vector<1x128x128xf32>
    %47 = vector.broadcast %30 : vector<1x1x128xf32> to vector<1x128x128xf32>
    %48 = arith.maximumf %46, %47 : vector<1x128x128xf32>
    %49 = arith.subf %45, %48 : vector<1x128x128xf32>
    %cst_13 = arith.constant 0.000000e+00 : f32
    %50 = vector.broadcast %cst_13 : f32 to vector<1x128x128xf32>
    %51 = arith.maximumf %49, %50 : vector<1x128x128xf32>
    %52 = arith.mulf %42, %51 : vector<1x128x128xf32>
    %53 = arith.mulf %4, %5 : vector<1x128x1xf32>
    %54 = arith.mulf %8, %9 : vector<1x1x128xf32>
    %cst_14 = arith.constant 1.700000e+00 : f32
    %55 = vector.broadcast %cst_14 : f32 to vector<1x128x128xf32>
    %56 = arith.mulf %52, %55 : vector<1x128x128xf32>
    %57 = vector.broadcast %53 : vector<1x128x1xf32> to vector<1x128x128xf32>
    %58 = vector.broadcast %54 : vector<1x1x128xf32> to vector<1x128x128xf32>
    %59 = arith.addf %57, %58 : vector<1x128x128xf32>
    %cst_15 = arith.constant 0.699999988 : f32
    %60 = vector.broadcast %cst_15 : f32 to vector<1x128x128xf32>
    %61 = arith.mulf %60, %59 : vector<1x128x128xf32>
    %62 = arith.cmpf ogt, %56, %61 : vector<1x128x128xf32>
    %63 = arith.extui %62 : vector<1x128x128xi1> to vector<1x128x128xi8>
    %c0_16 = arith.constant 0 : index
    %c0_17 = arith.constant 0 : index
    %c0_18 = arith.constant 0 : index
    %64 = vector.load %arg5[%c0_16, %c0_17, %c0_18] : memref<1x128x128xi8, #tpu.memory_space<vmem>>, vector<1x128x128xi8>
    tpu.vector_store %arg5[%c0_16, %c0_17, %c0_18], %63 {strides = array<i32>} : memref<1x128x128xi8, #tpu.memory_space<vmem>>, vector<1x128x128xi8>,
    return
  }
  func.func @transform_0(%arg0: i32, %arg1: i32, %arg2: i32) -> (i32, i32, i32) {
    %c0_i32 = arith.constant 0 : i32
    %c0_i32_0 = arith.constant 0 : i32
    return %arg0, %arg1, %c0_i32 : i32, i32, i32
  }
  func.func @transform_1(%arg0: i32, %arg1: i32, %arg2: i32) -> (i32, i32, i32) {
    %c0_i32 = arith.constant 0 : i32
    %c0_i32_0 = arith.constant 0 : i32
    return %arg0, %c0_i32, %arg2 : i32, i32, i32
  }
  func.func @transform_2(%arg0: i32, %arg1: i32, %arg2: i32) -> (i32, i32, i32) {
    %c0_i32 = arith.constant 0 : i32
    return %arg0, %arg1, %arg2 : i32, i32, i32
  }
}

</mosaic_0001>

<bundles_post_ra>
// kernel: _post_process_batch.2
= control target key start
LH: loop header
LB: loop body
LE: loop exit
PB: predicated region body
PF: predicated region fallthrough
CT: control target
= control target key end

     0   :  { %s389_s9 = smov 0   ;;  %s391_s10 = smov 0   ;;  %s425_s0 = inlined_call_operand.vmem [shape: f32[2,3,128], index: 0, kind: input, shape index: {}]   ;;  %s426_s1 = inlined_call_operand.vmem [shape: f32[2,1,128], index: 1, kind: output, shape index: {0}]   ;;  %s427_s2 = inlined_call_operand.vmem [shape: s32[2,1,128], index: 2, kind: output, shape index: {1}]  }
   0x1   :  { %s393_s11 = smov 0  }
   0x2 LB: > { %s25_s12 = sadd.s32 1, %s367_s10  ;;  %p315_p0 = scmp.ge.s32.totalorder %s371_s11, 1  ;;  %s371_s11 = sphi %s393_s11, %s13_s11   ;;  %s367_s10 = sphi %s391_s10, %s429_s10   ;;  %s363_s9 = sphi %s389_s9, %s428_s9  }
   0x3   : > { %p27_p1 = scmp.ge.s32.totalorder %s25_s12, 2  ;;  %p135_p2 = scmp.lt.s32.totalorder %s371_s11, 3 }
   0x5   : > { %s431_s12 = smov (%p27_p1, %s25_s12), 0  ;;  %p136_p3 = pnand %p315_p0, %p135_p2 }
   0x6   : > { %p166_p4 = scmp.lt.s32.totalorder (!%p136_p3), %s363_s9, 1 }
   0x7   : > { %139 = sbr.rel (%p136_p3) target bundleno = 57 (0x39), region = 24 }
   0xc   : > { %s433_s9 = smov (!%p166_p4, %s363_s9), 1  ;;  %v373_v3 = vmov 0  }
   0xd   : > { %s316_s13 = sshll.u32 %s433_s9, 2  ;;  %s184_s19 = scalar_lea.vmem %s427_s2, %s433_s9 }
   0xe   : > { %s172_s16 = scalar_lea.vmem %s425_s0, %s316_s13  ;;  %s178_s22 = scalar_lea.vmem %s426_s1, %s433_s9 }
   0xf   : > { %v185_v0 = vld [vmem:[%s172_s16] sm:$0x7] }
  0x10   : > { %v187_v1 = vrot.slane %v185_v0, 7 }
  0x12   : > { %vm189_vm0 = vcmp.gt.f32.partialorder %v185_v0, %v187_v1 }
  0x13   : > { %v190_v2 = vsel %vm189_vm0, %v185_v0, %v187_v1  ;;  %v191_v4 = vsel %vm189_vm0, 1, %v373_v3 }
  0x14   : > { %v193_v5 = vrot.slane %v190_v2, 7  ;;  %v197_v6 = vrot.slane %v191_v4, 7 }
  0x16   : > { %vm195_vm1 = vcmp.gt.f32.partialorder %v185_v0, %v193_v5 }
  0x17   : > { %v196_v7 = vsel %vm195_vm1, %v185_v0, %v193_v5  ;;  %v198_v8 = vsel %vm195_vm1, 2, %v197_v6 }
  0x18   : > { %v317_v9 = vmul.f32 -1.442695, %v196_v7  ;;  %v206_v10 = vadd.s32 1, %v198_v8 }
  0x1a   : > { %345 = vpow2.f32 %v317_v9  ;;  %207 = vst [vmem:[%s184_s19 - $0x2] sm:$0x4] %v206_v10 }
  0x27   : > { %v346_v11 = vpop.eup %345 }
  0x28   : > { %v202_v12 = vadd.f32 1.0, %v346_v11 }
  0x2a   : > { %347 = vrcp.f32 %v202_v12 }
  0x37   : > { %v348_v13 = vpop.eup %347 }
  0x38   : > { %205 = vst [vmem:[%s178_s22 - $0x2] sm:$0x4] %v348_v13 }
  0x39 PF: > { %s13_s11 = sadd.s32 1, %s371_s11   ;;  %s428_s9 = smov %s367_s10 }
  0x3a   : > { %p10_p5 = scmp.ge.s32.totalorder %s13_s11, 4   ;;  %s429_s10 = smov %s431_s12 }
  0x3c   :  { %12 = sbr.rel (!%p10_p5) target bundleno = 2 (0x2), region = 66 }

// kernel: _post_process_batch.3
= control target key start
LH: loop header
LB: loop body
LE: loop exit
PB: predicated region body
PF: predicated region fallthrough
CT: control target
= control target key end

     0   :  { %s1331_s9 = smov 0   ;;  %s1333_s10 = smov 0   ;;  %s1931_s0 = inlined_call_operand.vmem [shape: f32[2,128,7], index: 0, kind: input, shape index: {}]   ;;  %s1932_s1 = inlined_call_operand.vmem [shape: f32[2,7,128], index: 1, kind: input, shape index: {}]   ;;  %s1933_s2 = inlined_call_operand.vmem [shape: s8[2,128,128], index: 2, kind: output, shape index: {}]  }
   0x1   :  { %s1335_s11 = smov 0  }
   0x2 LB: > { %s31_s12 = sadd.s32 1, %s1305_s10  ;;  %p1242_p0 = scmp.ge.s32.totalorder %s1309_s11, 1  ;;  %s1309_s11 = sphi %s1335_s11, %s12_s11   ;;  %s1305_s10 = sphi %s1333_s10, %s1949_s10   ;;  %s1301_s9 = sphi %s1331_s9, %s1948_s9  }
   0x3   : > { %p33_p1 = scmp.ge.s32.totalorder %s31_s12, 2  ;;  %p156_p2 = scmp.lt.s32.totalorder %s1309_s11, 3 }
   0x5   : > { %s1951_s12 = smov (%p33_p1, %s31_s12), 0  ;;  %p157_p3 = pnand %p1242_p0, %p156_p2 }
   0x7   : > { %160 = sbr.rel (%p157_p3) target bundleno = 552 (0x228), region = 28 }
   0xc   : > { %p197_p4 = scmp.lt.s32.totalorder %s1301_s9, 1  ;;  %v1934_v0 = vmov 0   ;;  %s1312_s17 = smov 125  }
   0xd   : > { %1281 = vset.pattern.permute.xlu0 %v1934_v0  ;;  %1282 = vset.pattern.permute.xlu1 %v1934_v0  ;;  %s1314_s18 = smov 127  }
   0xe   : > { %s1953_s9 = smov (!%p197_p4, %s1301_s9), 1 }
   0xf   : > { %s1250_s13 = sshll.u32 %s1953_s9, 7  ;;  %s1245_s19 = sshll.u32 %s1953_s9, 3 }
  0x10   : > { %s1357_s16 = scalar_lea.vmem %s1931_s0, %s1250_s13  ;;  %s212_s22 = scalar_lea.vmem %s1932_s1, %s1245_s19 }
  0x11   : > { %v1360_v1 = vld [vmem:[%s1357_s16 + $0x10] sm:$0xff]  ;;  %v1363_v2 = vld [vmem:[%s1357_s16] sm:$0xff]  ;;  %v1368_v5 = vld [vmem:[%s1357_s16 + $0x18] sm:$0xff]  ;;  %s1251_s23 = sshll.u32 %s1953_s9, 5 }
  0x12   : > { %v247_v3 = vmul.f32 0.5, %v1360_v1  ;;  %v245_v4 = vmul.f32 0.5, %v1363_v2  ;;  %v1371_v6 = vld [vmem:[%s1357_s16 + $0x8] sm:$0xff]  ;;  %v248_v7 = vmul.f32 0.5, %v1368_v5  ;;  %v1381_v10 = vld [vmem:[%s1357_s16 + $0x20] sm:$0xff]  ;;  %v1388_v13 = vld [vmem:[%s1357_s16 + $0x38] sm:$0xff]  ;;  %s1870_s26 = scalar_lea.vmem %s1933_s2, %s1251_s23 }
  0x13   : > { %v246_v8 = vmul.f32 0.5, %v1371_v6  ;;  %v1378_v9 = vld [vmem:[%s1357_s16 + $0x28] sm:$0xff]  ;;  %v249_v12 = vmul.f32 0.5, %v1381_v10  ;;  %v1391_v14 = vld [vmem:[%s1357_s16 + $0x30] sm:$0xff]  ;;  %v252_v15 = vmul.f32 0.5, %v1388_v13  ;;  %v1401_v18 = vld [vmem:[%s1357_s16 + $0x40] sm:$0xff] }
  0x14   : > { %281 = vrot.lane.b32.xlu1 %v247_v3, %s1312_s17  ;;  %277 = vrot.lane.b32.xlu0 %v245_v4, %s1312_s17  ;;  %v250_v11 = vmul.f32 0.5, %v1378_v9  ;;  %v251_v16 = vmul.f32 0.5, %v1391_v14  ;;  %v1398_v17 = vld [vmem:[%s1357_s16 + $0x48] sm:$0xff]  ;;  %v253_v20 = vmul.f32 0.5, %v1401_v18  ;;  %v1408_v21 = vld [vmem:[%s1357_s16 + $0x58] sm:$0xff] }
  0x15   : > { %v254_v19 = vmul.f32 0.5, %v1398_v17  ;;  %v1411_v22 = vld [vmem:[%s1357_s16 + $0x50] sm:$0xff]  ;;  %v256_v23 = vmul.f32 0.5, %v1408_v21  ;;  %v1418_v25 = vld [vmem:[%s1357_s16 + $0x68] sm:$0xff]  ;;  %v1421_v26 = vld [vmem:[%s1357_s16 + $0x60] sm:$0xff] }
  0x16   : > { %v255_v24 = vmul.f32 0.5, %v1411_v22  ;;  %v258_v27 = vmul.f32 0.5, %v1418_v25  ;;  %v257_v28 = vmul.f32 0.5, %v1421_v26  ;;  %v1428_v29 = vld [vmem:[%s1357_s16 + $0x78] sm:$0xff]  ;;  %v1431_v30 = vld [vmem:[%s1357_s16 + $0x70] sm:$0xff] }
  0x17   : > { %v260_v31 = vmul.f32 0.5, %v1428_v29  ;;  %v259_v32 = vmul.f32 0.5, %v1431_v30 }
  0x18   : > { %283 = vrot.lane.b32.xlu1 %v248_v7, %s1312_s17  ;;  %279 = vrot.lane.b32.xlu0 %v246_v8, %s1312_s17 }
  0x1c   : > { %287 = vrot.lane.b32.xlu1 %v250_v11, %s1312_s17  ;;  %285 = vrot.lane.b32.xlu0 %v249_v12, %s1312_s17 }
  0x20   : > { %291 = vrot.lane.b32.xlu1 %v252_v15, %s1312_s17  ;;  %289 = vrot.lane.b32.xlu0 %v251_v16, %s1312_s17 }
  0x24   : > { %295 = vrot.lane.b32.xlu1 %v254_v19, %s1312_s17  ;;  %293 = vrot.lane.b32.xlu0 %v253_v20, %s1312_s17 }
  0x28   : > { %299 = vrot.lane.b32.xlu1 %v256_v23, %s1312_s17  ;;  %297 = vrot.lane.b32.xlu0 %v255_v24, %s1312_s17 }
  0x2c   : > { %303 = vrot.lane.b32.xlu1 %v258_v27, %s1312_s17  ;;  %301 = vrot.lane.b32.xlu0 %v257_v28, %s1312_s17 }
  0x30   : > { %307 = vrot.lane.b32.xlu1 %v260_v31, %s1312_s17  ;;  %305 = vrot.lane.b32.xlu0 %v259_v32, %s1312_s17 }
  0x86   : > { %v282_v33 = vpop.permute.xlu1 %281  ;;  %v278_v34 = vpop.permute.xlu0 %277 }
  0x87   : > { %v1440_v35 = vadd.f32 %v278_v34, %v1363_v2  ;;  %v1450_v40 = vadd.f32 %v282_v33, %v1360_v1  ;;  %v325_v7 = vsub.f32 %v1363_v2, %v278_v34  ;;  %v327_v11 = vsub.f32 %v1360_v1, %v282_v33 }
  0x88   : > { %v1313_v34 = vmov 1  }
  0x89   : > { %365 = vperm.xlu0 %1281, %v1440_v35  }
  0x8a   : > { %v284_v36 = vpop.permute.xlu1 %283  ;;  %v280_v37 = vpop.permute.xlu0 %279 }
  0x8b   : > { %v1444_v38 = vadd.f32 %v284_v36, %v1368_v5  ;;  %v1447_v39 = vadd.f32 %v280_v37, %v1371_v6  ;;  %v326_v4 = vsub.f32 %v1371_v6, %v280_v37  ;;  %v328_v8 = vsub.f32 %v1368_v5, %v284_v36 }
  0x8d   : > { %380 = vperm.xlu0 %1281, %v1444_v38   ;;  %370 = vperm.xlu1 %1282, %v1447_v39  }
  0x8e   : > { %v288_v41 = vpop.permute.xlu1 %287  ;;  %v286_v42 = vpop.permute.xlu0 %285 }
  0x8f   : > { %v1455_v43 = vadd.f32 %v288_v41, %v1378_v9  ;;  %v1460_v44 = vadd.f32 %v286_v42, %v1381_v10  ;;  %v330_v12 = vsub.f32 %v1378_v9, %v288_v41  ;;  %v329_v16 = vsub.f32 %v1381_v10, %v286_v42  ;;  %v1578_v42 = vld [vmem:[%s212_s22] sm:$0x7f] }
  0x91   : > { %390 = vperm.xlu0 %1281, %v1455_v43   ;;  %375 = vperm.xlu1 %1282, %v1450_v40  }
  0x92   : > { %v292_v45 = vpop.permute.xlu1 %291  ;;  %v290_v46 = vpop.permute.xlu0 %289 }
  0x93   : > { %v1463_v47 = vadd.f32 %v292_v45, %v1388_v13  ;;  %v1468_v48 = vadd.f32 %v290_v46, %v1391_v14  ;;  %v1491_v15 = vsub.f32 %v1388_v13, %v292_v45  ;;  %v1499_v20 = vsub.f32 %v1391_v14, %v290_v46 }
  0x94   : > { %v357_v45 = vmul.f32 0.5, %v1578_v42  ;;  %v443_v46 = vlaneseq }
  0x95   : > { %400 = vperm.xlu0 %1281, %v1463_v47   ;;  %385 = vperm.xlu1 %1282, %v1460_v44  }
  0x96   : > { %v296_v49 = vpop.permute.xlu1 %295  ;;  %v294_v50 = vpop.permute.xlu0 %293 }
  0x97   : > { %v1471_v51 = vadd.f32 %v296_v49, %v1398_v17  ;;  %v349_v52 = vadd.f32 %v294_v50, %v1401_v18  ;;  %v1496_v19 = vsub.f32 %v1398_v17, %v296_v49  ;;  %v1507_v24 = vsub.f32 %v1401_v18, %v294_v50 }
  0x98   : > { %v359_v49 = vrot.slane %v357_v45, 3  ;;  %v1595_v50 = vshrl.u32 %v443_v46, 7 }
  0x99   : > { %410 = vperm.xlu0 %1281, %v1471_v51   ;;  %395 = vperm.xlu1 %1282, %v1468_v48  }
  0x9a   : > { %v300_v53 = vpop.permute.xlu1 %299  ;;  %v298_v54 = vpop.permute.xlu0 %297  ;;  %1937 = vst [vmem:[#allocation2_spill] sm:$0xff] %v1595_v50 }
  0x9b   : > { %v1477_v55 = vadd.f32 %v300_v53, %v1408_v21  ;;  %v351_v56 = vadd.f32 %v298_v54, %v1411_v22  ;;  %v1504_v23 = vsub.f32 %v1408_v21, %v300_v53  ;;  %v1515_v28 = vsub.f32 %v1411_v22, %v298_v54 }
  0x9c   : > { %v1602_v53 = vsub.f32 %v1578_v42, %v359_v49  ;;  %v1607_v54 = vadd.f32 %v359_v49, %v1578_v42 }
  0x9d   : > { %420 = vperm.xlu0 %1281, %v1477_v55   ;;  %405 = vperm.xlu1 %1282, %v349_v52  }
  0x9e   : > { %v304_v57 = vpop.permute.xlu1 %303  ;;  %v302_v58 = vpop.permute.xlu0 %301 }
  0x9f   : > { %v354_v59 = vadd.f32 %v304_v57, %v1418_v25  ;;  %v353_v60 = vadd.f32 %v302_v58, %v1421_v26  ;;  %v1512_v27 = vsub.f32 %v1418_v25, %v304_v57  ;;  %v1523_v32 = vsub.f32 %v1421_v26, %v302_v58 }
  0xa1   : > { %430 = vperm.xlu0 %1281, %v354_v59   ;;  %415 = vperm.xlu1 %1282, %v351_v56  }
  0xa2   : > { %v308_v61 = vpop.permute.xlu1 %307  ;;  %v306_v62 = vpop.permute.xlu0 %305 }
  0xa3   : > { %v356_v63 = vadd.f32 %v308_v61, %v1428_v29  ;;  %v355_v3 = vadd.f32 %v306_v62, %v1431_v30  ;;  %v1520_v31 = vsub.f32 %v1428_v29, %v308_v61  ;;  %v1528_v33 = vsub.f32 %v1431_v30, %v306_v62 }
  0xa5   : > { %440 = vperm.xlu0 %1281, %v356_v63   ;;  %425 = vperm.xlu1 %1282, %v353_v60  }
  0xa9   : > { %470 = vperm.xlu0 %1281, %v326_v4   ;;  %435 = vperm.xlu1 %1282, %v355_v3  }
  0xad   : > { %480 = vperm.xlu0 %1281, %v328_v8   ;;  %465 = vperm.xlu1 %1282, %v325_v7  }
  0xb1   : > { %490 = vperm.xlu0 %1281, %v330_v12   ;;  %475 = vperm.xlu1 %1282, %v327_v11  }
  0xb5   : > { %500 = vperm.xlu0 %1281, %v1491_v15   ;;  %485 = vperm.xlu1 %1282, %v329_v16  }
  0xb9   : > { %510 = vperm.xlu0 %1281, %v1496_v19   ;;  %495 = vperm.xlu1 %1282, %v1499_v20  }
  0xbd   : > { %520 = vperm.xlu0 %1281, %v1504_v23   ;;  %505 = vperm.xlu1 %1282, %v1507_v24  }
  0xc1   : > { %530 = vperm.xlu0 %1281, %v1512_v27   ;;  %515 = vperm.xlu1 %1282, %v1515_v28  }
  0xc5   : > { %540 = vperm.xlu0 %1281, %v1520_v31   ;;  %525 = vperm.xlu1 %1282, %v1523_v32  }
  0xc9   : > { %1284 = vset.pattern.permute.xlu0 %v1313_v34  ;;  %535 = vperm.xlu1 %1282, %v1528_v33  }
  0xca   : > { %600 = vperm.xlu0 %1284, %v1447_v39  }
  0xcd   : > { %1283 = vset.pattern.permute.xlu1 %v1313_v34 }
  0xce   : > { %612 = vperm.xlu0 %1284, %v1460_v44   ;;  %596 = vperm.xlu1 %1283, %v1440_v35  }
  0xd2   : > { %620 = vperm.xlu0 %1284, %v1468_v48   ;;  %604 = vperm.xlu1 %1283, %v1450_v40  }
  0xd6   : > { %628 = vperm.xlu0 %1284, %v349_v52   ;;  %608 = vperm.xlu1 %1283, %v1444_v38  }
  0xda   : > { %636 = vperm.xlu0 %1284, %v351_v56   ;;  %616 = vperm.xlu1 %1283, %v1455_v43  }
  0xde   : > { %644 = vperm.xlu0 %1284, %v353_v60   ;;  %624 = vperm.xlu1 %1283, %v1463_v47  }
  0xe2   : > { %652 = vperm.xlu0 %1284, %v355_v3   ;;  %632 = vperm.xlu1 %1283, %v1471_v51   ;;  %v1315_v3 = vmov 3  }
  0xe6   : > { %680 = vperm.xlu0 %1284, %v325_v7   ;;  %640 = vperm.xlu1 %1283, %v1477_v55   ;;  %v445_v55 = vsub.s32 0, %v1595_v50 }
  0xe8   : > { %v1615_v58 = vrot.slane %v1602_v53, %v445_v55 }
  0xea   : > { %688 = vperm.xlu0 %1284, %v327_v11   ;;  %648 = vperm.xlu1 %1283, %v354_v59   ;;  %v1620_v59 = vrot.slane %v1607_v54, %v445_v55 }
  0xee   : > { %696 = vperm.xlu0 %1284, %v329_v16   ;;  %656 = vperm.xlu1 %1283, %v356_v63  }
  0xf2   : > { %827 = vrot.lane.b32.xlu0 %v1363_v2, %s1314_s18  ;;  %684 = vperm.xlu1 %1283, %v326_v4  }
  0xf6   : > { %831 = vrot.lane.b32.xlu0 %v1360_v1, %s1314_s18  ;;  %692 = vperm.xlu1 %1283, %v328_v8  }
  0xfa   : > { %835 = vrot.lane.b32.xlu0 %v1381_v10, %s1314_s18  ;;  %700 = vperm.xlu1 %1283, %v330_v12  }
  0xfe   : > { %839 = vrot.lane.b32.xlu0 %v1391_v14, %s1314_s18  ;;  %829 = vrot.lane.b32.xlu1 %v1371_v6, %s1314_s18 }
 0x102   : > { %843 = vrot.lane.b32.xlu0 %v1401_v18, %s1314_s18  ;;  %833 = vrot.lane.b32.xlu1 %v1368_v5, %s1314_s18 }
 0x104   : > { %v366_v35 = vpop.permute.xlu0 %365 }
 0x105   : > { %v447_v11 = vmin.f32 %v366_v35, %v1620_v59 }
 0x106   : > { %847 = vrot.lane.b32.xlu0 %v1411_v22, %s1314_s18  ;;  %837 = vrot.lane.b32.xlu1 %v1378_v9, %s1314_s18 }
 0x108   : > { %v371_v36 = vpop.permute.xlu1 %370  ;;  %v381_v37 = vpop.permute.xlu0 %380 }
 0x109   : > { %v448_v62 = vmin.f32 %v371_v36, %v1620_v59  ;;  %v450_v12 = vmin.f32 %v381_v37, %v1620_v59 }
 0x10a   : > { %851 = vrot.lane.b32.xlu0 %v1421_v26, %s1314_s18  ;;  %841 = vrot.lane.b32.xlu1 %v1388_v13, %s1314_s18 }
 0x10c   : > { %v376_v38 = vpop.permute.xlu1 %375  ;;  %v391_v39 = vpop.permute.xlu0 %390 }
 0x10e   : > { %855 = vrot.lane.b32.xlu0 %v1431_v30, %s1314_s18  ;;  %845 = vrot.lane.b32.xlu1 %v1398_v17, %s1314_s18 }
 0x110   : > { %v1568_v40 = vpop.permute.xlu1 %385  ;;  %v1570_v41 = vpop.permute.xlu0 %400 }
 0x111   : > { %v451_v45 = vmin.f32 %v1568_v40, %v1620_v59 }
 0x112   : > { %704 = vperm.xlu0 %1284, %v1499_v20   ;;  %849 = vrot.lane.b32.xlu1 %v1408_v21, %s1314_s18 }
 0x114   : > { %v1580_v43 = vpop.permute.xlu1 %395  ;;  %v1582_v44 = vpop.permute.xlu0 %410 }
 0x115   : > { %v456_v40 = vmin.f32 %v1582_v44, %v1620_v59 }
 0x116   : > { %712 = vperm.xlu0 %1284, %v1507_v24   ;;  %853 = vrot.lane.b32.xlu1 %v1418_v25, %s1314_s18 }
 0x118   : > { %v1588_v47 = vpop.permute.xlu1 %405  ;;  %v1590_v48 = vpop.permute.xlu0 %420 }
 0x11a   : > { %720 = vperm.xlu0 %1284, %v1515_v28   ;;  %857 = vrot.lane.b32.xlu1 %v1428_v29, %s1314_s18  ;;  %v449_v28 = vmin.f32 %v376_v38, %v1620_v59  ;;  %v454_v38 = vmin.f32 %v1570_v41, %v1620_v59 }
 0x11c   : > { %v1597_v51 = vpop.permute.xlu1 %415  ;;  %v1599_v52 = vpop.permute.xlu0 %430 }
 0x11e   : > { %728 = vperm.xlu0 %1284, %v1523_v32   ;;  %708 = vperm.xlu1 %1283, %v1491_v15   ;;  %v452_v32 = vmin.f32 %v391_v39, %v1620_v59 }
 0x120   : > { %v1610_v56 = vpop.permute.xlu1 %425  ;;  %v1612_v57 = vpop.permute.xlu0 %440 }
 0x122   : > { %736 = vperm.xlu0 %1284, %v1528_v33   ;;  %716 = vperm.xlu1 %1283, %v1496_v19  }
 0x124   : > { %v1622_v60 = vpop.permute.xlu1 %435  ;;  %v471_v61 = vpop.permute.xlu0 %470 }
 0x125   : > { %v548_v63 = vmax.f32 %v471_v61, %v1615_v58 }
 0x126   : > { %724 = vperm.xlu1 %1283, %v1504_v23   ;;  %1285 = vset.pattern.permute.xlu0 %v1315_v3 }
 0x127   : > { %v1627_v4 = vsub.f32 %v448_v62, %v548_v63  ;;  %v453_v62 = vmin.f32 %v1580_v43, %v1620_v59 }
 0x128   : > { %v466_v7 = vpop.permute.xlu1 %465  ;;  %v481_v8 = vpop.permute.xlu0 %480 }
 0x129   : > { %v547_v15 = vmax.f32 %v466_v7, %v1615_v58  ;;  %v550_v16 = vmax.f32 %v481_v8, %v1615_v58 }
 0x12a   : > { %732 = vperm.xlu1 %1283, %v1512_v27  }
 0x12b   : > { %v1634_v19 = vsub.f32 %v447_v11, %v547_v15  ;;  %v1636_v20 = vsub.f32 %v450_v12, %v550_v16  ;;  %v455_v12 = vmin.f32 %v1588_v47, %v1620_v59  ;;  %v458_v15 = vmin.f32 %v1590_v48, %v1620_v59 }
 0x12c   : > { %v476_v23 = vpop.permute.xlu1 %475  ;;  %v491_v24 = vpop.permute.xlu0 %490 }
 0x12d   : > { %v549_v33 = vmax.f32 %v476_v23, %v1615_v58  ;;  %v552_v34 = vmax.f32 %v491_v24, %v1615_v58 }
 0x12e   : > { %740 = vperm.xlu1 %1283, %v1520_v31  }
 0x12f   : > { %v1643_v35 = vsub.f32 %v449_v28, %v549_v33  ;;  %v1645_v36 = vsub.f32 %v452_v32, %v552_v34  ;;  %v457_v32 = vmin.f32 %v1597_v51, %v1620_v59  ;;  %v460_v33 = vmin.f32 %v1599_v52, %v1620_v59 }
 0x130   : > { %v486_v27 = vpop.permute.xlu1 %485  ;;  %v501_v37 = vpop.permute.xlu0 %500 }
 0x131   : > { %v551_v39 = vmax.f32 %v486_v27, %v1615_v58  ;;  %v554_v46 = vmax.f32 %v501_v37, %v1615_v58 }
 0x132   : > { %1286 = vset.pattern.permute.xlu1 %v1315_v3 }
 0x133   : > { %v1653_v49 = vsub.f32 %v451_v45, %v551_v39  ;;  %v1655_v31 = vsub.f32 %v454_v38, %v554_v46  ;;  %v459_v38 = vmin.f32 %v1610_v56, %v1620_v59  ;;  %v462_v39 = vmin.f32 %v1612_v57, %v1620_v59 }
 0x134   : > { %v496_v55 = vpop.permute.xlu1 %495  ;;  %v511_v61 = vpop.permute.xlu0 %510 }
 0x135   : > { %v553_v63 = vmax.f32 %v496_v55, %v1615_v58  ;;  %v556_v41 = vmax.f32 %v511_v61, %v1615_v58 }
 0x137   : > { %v1663_v7 = vsub.f32 %v453_v62, %v553_v63  ;;  %v1665_v8 = vsub.f32 %v456_v40, %v556_v41  ;;  %v461_v62 = vmin.f32 %v1622_v60, %v1620_v59 }
 0x138   : > { %v506_v3 = vpop.permute.xlu1 %505  ;;  %v521_v11 = vpop.permute.xlu0 %520 }
 0x139   : > { %v555_v43 = vmax.f32 %v506_v3, %v1615_v58  ;;  %v558_v44 = vmax.f32 %v521_v11, %v1615_v58 }
 0x13b   : > { %v1673_v16 = vsub.f32 %v455_v12, %v555_v43  ;;  %v1675_v23 = vsub.f32 %v458_v15, %v558_v44 }
 0x13c   : > { %v516_v24 = vpop.permute.xlu1 %515  ;;  %v531_v28 = vpop.permute.xlu0 %530 }
 0x13d   : > { %v557_v47 = vmax.f32 %v516_v24, %v1615_v58  ;;  %v560_v48 = vmax.f32 %v531_v28, %v1615_v58 }
 0x13f   : > { %v1683_v34 = vsub.f32 %v457_v32, %v557_v47  ;;  %v1685_v27 = vsub.f32 %v460_v33, %v560_v48 }
 0x140   : > { %v526_v37 = vpop.permute.xlu1 %525  ;;  %v541_v45 = vpop.permute.xlu0 %540 }
 0x141   : > { %v559_v51 = vmax.f32 %v526_v37, %v1615_v58  ;;  %v562_v52 = vmax.f32 %v541_v45, %v1615_v58 }
 0x143   : > { %v1693_v46 = vsub.f32 %v459_v38, %v559_v51  ;;  %v1695_v55 = vsub.f32 %v462_v39, %v562_v52  ;;  %v579_v52 = vmax.f32 %v1634_v19, 0.0 }
 0x144   : > { %v536_v61 = vpop.permute.xlu1 %535 }
 0x145   : > { %v561_v40 = vmax.f32 %v536_v61, %v1615_v58  ;;  %v601_v63 = vpop.permute.xlu0 %600  ;;  %v661_v58 = vsub.s32 1, %v1595_v50 }
 0x147   : > { %v1700_v41 = vsub.f32 %v461_v62, %v561_v40  ;;  %v1718_v32 = vrot.slane %v1602_v53, %v661_v58  ;;  %v1721_v33 = vrot.slane %v1607_v54, %v661_v58 }
 0x149   : > { %v597_v56 = vpop.permute.xlu1 %596  ;;  %v613_v3 = vpop.permute.xlu0 %612 }
 0x14a   : > { %v663_v37 = vmin.f32 %v597_v56, %v1721_v33  ;;  %v581_v56 = vmax.f32 %v1643_v35, 0.0 }
 0x14d   : > { %v605_v57 = vpop.permute.xlu1 %604  ;;  %v1702_v11 = vpop.permute.xlu0 %620 }
 0x14e   : > { %v665_v61 = vmin.f32 %v605_v57, %v1721_v33  ;;  %v583_v57 = vmax.f32 %v1653_v49, 0.0 }
 0x151   : > { %v609_v12 = vpop.permute.xlu1 %608  ;;  %v1704_v15 = vpop.permute.xlu0 %628 }
 0x155   : > { %v617_v43 = vpop.permute.xlu1 %616  ;;  %v1706_v44 = vpop.permute.xlu0 %636 }
 0x159   : > { %v1708_v24 = vpop.permute.xlu1 %624  ;;  %v1710_v28 = vpop.permute.xlu0 %644 }
 0x15d   : > { %v1713_v59 = vpop.permute.xlu1 %632  ;;  %v1715_v60 = vpop.permute.xlu0 %652 }
 0x161   : > { %v1723_v47 = vpop.permute.xlu1 %640  ;;  %v681_v48 = vpop.permute.xlu0 %680 }
 0x162   : > { %v747_v45 = vmax.f32 %v681_v48, %v1718_v32  ;;  %v667_v48 = vmin.f32 %v613_v3, %v1721_v33 }
 0x164   : > { %v763_v38 = vsub.f32 %v663_v37, %v747_v45 }
 0x165   : > { %v1727_v39 = vpop.permute.xlu1 %648  ;;  %v689_v51 = vpop.permute.xlu0 %688 }
 0x166   : > { %v779_v53 = vmax.f32 %v763_v38, 0.0  ;;  %v749_v62 = vmax.f32 %v689_v51, %v1718_v32 }
 0x168   : > { %v1732_v54 = vmul.f32 %v779_v53, %v579_v52  ;;  %v765_v40 = vsub.f32 %v665_v61, %v749_v62  ;;  %v664_v52 = vmin.f32 %v601_v63, %v1721_v33 }
 0x169   : > { %v1734_v58 = vpop.permute.xlu1 %656  ;;  %v697_v0 = vpop.permute.xlu0 %696 }
 0x16a   : > { %v781_v37 = vmax.f32 %v765_v40, 0.0  ;;  %v751_v45 = vmax.f32 %v697_v0, %v1718_v32 }
 0x16c   : > { %v1739_v50 = vmul.f32 %v781_v37, %v581_v56  ;;  %v767_v19 = vsub.f32 %v667_v48, %v751_v45  ;;  %v580_v56 = vmax.f32 %v1627_v4, 0.0  ;;  %v666_v48 = vmin.f32 %v609_v12, %v1721_v33 }
 0x16d   : > { %v685_v38 = vpop.permute.xlu1 %684  ;;  %v828_v51 = vpop.permute.xlu0 %827 }
 0x16e   : > { %v783_v61 = vmax.f32 %v767_v19, 0.0  ;;  %v748_v53 = vmax.f32 %v685_v38, %v1718_v32  ;;  %v875_v62 = vmul.f32 %v828_v51, %v1363_v2  ;;  %v582_v2 = vmax.f32 %v1636_v20, 0.0 }
 0x170   : > { %v1745_v35 = vmul.f32 %v783_v61, %v583_v57  ;;  %v764_v3 = vsub.f32 %v664_v52, %v748_v53  ;;  %913 = vperm.xlu0 %1285, %v875_v62   ;;  %v668_v57 = vmin.f32 %v617_v43, %v1721_v33  ;;  %v584_v62 = vmax.f32 %v1645_v36, 0.0 }
 0x171   : > { %v693_v40 = vpop.permute.xlu1 %692  ;;  %v832_v0 = vpop.permute.xlu0 %831 }
 0x172   : > { %v780_v49 = vmax.f32 %v764_v3, 0.0  ;;  %v750_v37 = vmax.f32 %v693_v40, %v1718_v32 }
 0x174   : > { %v1750_v45 = vmul.f32 %v780_v49, %v580_v56  ;;  %v766_v63 = vsub.f32 %v666_v48, %v750_v37  ;;  %v877_v56 = vmul.f32 %v832_v0, %v1360_v1 }
 0x175   : > { %v701_v19 = vpop.permute.xlu1 %700  ;;  %v836_v38 = vpop.permute.xlu0 %835 }
 0x176   : > { %v782_v51 = vmax.f32 %v766_v63, 0.0  ;;  %v752_v52 = vmax.f32 %v701_v19, %v1718_v32  ;;  %v879_v37 = vmul.f32 %v836_v38, %v1381_v10 }
 0x178   : > { %v1755_v61 = vmul.f32 %v782_v51, %v582_v2  ;;  %v768_v4 = vsub.f32 %v668_v57, %v752_v52  ;;  %v669_v52 = vmin.f32 %v1702_v11, %v1721_v33 }
 0x179   : > { %v830_v53 = vpop.permute.xlu1 %829  ;;  %v840_v12 = vpop.permute.xlu0 %839 }
 0x17a   : > { %v784_v3 = vmax.f32 %v768_v4, 0.0  ;;  %v876_v40 = vmul.f32 %v830_v53, %v1371_v6  ;;  %v881_v2 = vmul.f32 %v840_v12, %v1391_v14 }
 0x17c   : > { %v1760_v48 = vmul.f32 %v784_v3, %v584_v62  ;;  %918 = vperm.xlu1 %1286, %v876_v40   ;;  %v671_v62 = vmin.f32 %v1704_v15, %v1721_v33 }
 0x17d   : > { %v834_v20 = vpop.permute.xlu1 %833  ;;  %v844_v43 = vpop.permute.xlu0 %843 }
 0x17e   : > { %v878_v49 = vmul.f32 %v834_v20, %v1368_v5  ;;  %v883_v57 = vmul.f32 %v844_v43, %v1401_v18  ;;  %v587_v20 = vmax.f32 %v1673_v16, 0.0  ;;  %v670_v16 = vmin.f32 %v1708_v24, %v1721_v33 }
 0x17f   : > { %v672_v24 = vmin.f32 %v1713_v59, %v1721_v33  ;;  %v593_v59 = vmax.f32 %v1700_v41, 0.0 }
 0x180   : > { %928 = vperm.xlu0 %1285, %v878_v49   ;;  %923 = vperm.xlu1 %1286, %v877_v56   ;;  %v673_v49 = vmin.f32 %v1706_v44, %v1721_v33  ;;  %v675_v44 = vmin.f32 %v1710_v28, %v1721_v33 }
 0x181   : > { %v838_v63 = vpop.permute.xlu1 %837  ;;  %v848_v19 = vpop.permute.xlu0 %847 }
 0x182   : > { %v880_v36 = vmul.f32 %v838_v63, %v1378_v9  ;;  %v885_v51 = vmul.f32 %v848_v19, %v1411_v22  ;;  %v589_v19 = vmax.f32 %v1683_v34, 0.0  ;;  %v591_v34 = vmax.f32 %v1693_v46, 0.0 }
 0x184   : > { %938 = vperm.xlu0 %1285, %v880_v36   ;;  %933 = vperm.xlu1 %1286, %v879_v37  }
 0x185   : > { %v842_v1 = vpop.permute.xlu1 %841  ;;  %v852_v6 = vpop.permute.xlu0 %851 }
 0x186   : > { %v882_v0 = vmul.f32 %v842_v1, %v1388_v13  ;;  %v887_v18 = vmul.f32 %v852_v6, %v1421_v26 }
 0x188   : > { %948 = vperm.xlu0 %1285, %v882_v0   ;;  %943 = vperm.xlu1 %1286, %v881_v2  }
 0x189   : > { %v846_v5 = vpop.permute.xlu1 %845  ;;  %v856_v10 = vpop.permute.xlu0 %855 }
 0x18a   : > { %v884_v38 = vmul.f32 %v846_v5, %v1398_v17  ;;  %v585_v17 = vmax.f32 %v1663_v7, 0.0 }
 0x18c   : > { %958 = vperm.xlu0 %1285, %v884_v38   ;;  %953 = vperm.xlu1 %1286, %v883_v57   ;;  %v677_v38 = vmin.f32 %v1715_v60, %v1721_v33  ;;  %v674_v60 = vmin.f32 %v1723_v47, %v1721_v33 }
 0x18d   : > { %v850_v9 = vpop.permute.xlu1 %849  ;;  %v705_v14 = vpop.permute.xlu0 %704 }
 0x18e   : > { %v886_v4 = vmul.f32 %v850_v9, %v1408_v21  ;;  %v753_v13 = vmax.f32 %v705_v14, %v1718_v32  ;;  %v889_v21 = vmul.f32 %v856_v10, %v1431_v30  ;;  %v586_v10 = vmax.f32 %v1655_v31, 0.0 }
 0x190   : > { %v769_v53 = vsub.f32 %v669_v52, %v753_v13  ;;  %968 = vperm.xlu0 %1285, %v886_v4   ;;  %963 = vperm.xlu1 %1286, %v885_v51  }
 0x191   : > { %v854_v12 = vpop.permute.xlu1 %853  ;;  %v713_v22 = vpop.permute.xlu0 %712 }
 0x192   : > { %v785_v3 = vmax.f32 %v769_v53, 0.0  ;;  %v888_v40 = vmul.f32 %v854_v12, %v1418_v25  ;;  %v755_v11 = vmax.f32 %v713_v22, %v1718_v32  ;;  %v588_v53 = vmax.f32 %v1665_v8, 0.0 }
 0x193   : > { %v676_v8 = vmin.f32 %v1727_v39, %v1721_v33  ;;  %v594_v39 = vmax.f32 %v1695_v55, 0.0  ;;  %v895_v55 = vmul.f32 1.7, %v1732_v54  ;;  %v898_v54 = vmul.f32 1.7, %v1755_v61 }
 0x194   : > { %v1781_v56 = vmul.f32 %v785_v3, %v585_v17  ;;  %v771_v26 = vsub.f32 %v671_v62, %v755_v11  ;;  %978 = vperm.xlu0 %1285, %v888_v40   ;;  %973 = vperm.xlu1 %1286, %v887_v18  }
 0x195   : > { %v858_v7 = vpop.permute.xlu1 %857  ;;  %v721_v43 = vpop.permute.xlu0 %720 }
 0x196   : > { %v787_v15 = vmax.f32 %v771_v26, 0.0  ;;  %v890_v37 = vmul.f32 %v858_v7, %v1428_v29  ;;  %v757_v25 = vmax.f32 %v721_v43, %v1718_v32  ;;  %v590_v26 = vmax.f32 %v1675_v23, 0.0 }
 0x198   : > { %v1788_v63 = vmul.f32 %v787_v15, %v587_v20  ;;  %v773_v30 = vsub.f32 %v673_v49, %v757_v25  ;;  %988 = vperm.xlu0 %1285, %v890_v37   ;;  %983 = vperm.xlu1 %1286, %v889_v21   ;;  %v592_v49 = vmax.f32 %v1685_v27, 0.0  ;;  %v678_v15 = vmin.f32 %v1734_v58, %v1721_v33 }
 0x199   : > { %v709_v36 = vpop.permute.xlu1 %708  ;;  %v729_v2 = vpop.permute.xlu0 %728 }
 0x19a   : > { %v789_v1 = vmax.f32 %v773_v30, 0.0  ;;  %v754_v29 = vmax.f32 %v709_v36, %v1718_v32  ;;  %v759_v6 = vmax.f32 %v729_v2, %v1718_v32  ;;  %v892_v36 = vrot.slane %v1578_v42, 1 }
 0x19c   : > { %v1797_v0 = vmul.f32 %v789_v1, %v589_v19  ;;  %v770_v57 = vsub.f32 %v670_v16, %v754_v29  ;;  %v775_v5 = vsub.f32 %v675_v44, %v759_v6  ;;  %v894_v2 = vmul.f32 %v892_v36, %v1578_v42  ;;  %v1938_v44 = vld [vmem:[#allocation2_spill] sm:$0xff] }
 0x19d   : > { %v717_v28 = vpop.permute.xlu1 %716  ;;  %v737_v51 = vpop.permute.xlu0 %736  ;;  %v993_v27 = vsub.s32 3, %v1938_v44 }
 0x19e   : > { %v786_v9 = vmax.f32 %v770_v57, 0.0  ;;  %v791_v14 = vmax.f32 %v775_v5, 0.0  ;;  %v756_v52 = vmax.f32 %v717_v28, %v1718_v32  ;;  %v761_v4 = vmax.f32 %v737_v51, %v1718_v32 }
 0x19f   : > { %v1838_v1 = vrot.slane %v894_v2, %v993_v27  ;;  %v896_v57 = vmul.f32 1.7, %v1750_v45  ;;  %v897_v28 = vmul.f32 1.7, %v1739_v50  ;;  %v905_v44 = vmul.f32 1.7, %v1797_v0 }
 0x1a0   : > { %v1807_v13 = vmul.f32 %v786_v9, %v586_v10  ;;  %v1809_v18 = vmul.f32 %v791_v14, %v591_v34  ;;  %v772_v31 = vsub.f32 %v672_v24, %v756_v52  ;;  %v777_v46 = vsub.f32 %v677_v38, %v761_v4 }
 0x1a1   : > { %v725_v17 = vpop.permute.xlu1 %724 }
 0x1a2   : > { %v788_v12 = vmax.f32 %v772_v31, 0.0  ;;  %v793_v22 = vmax.f32 %v777_v46, 0.0  ;;  %v758_v62 = vmax.f32 %v725_v17, %v1718_v32  ;;  %v899_v31 = vmul.f32 1.7, %v1745_v35 }
 0x1a4   : > { %v1816_v3 = vmul.f32 %v788_v12, %v588_v53  ;;  %v1818_v40 = vmul.f32 %v793_v22, %v593_v59  ;;  %v774_v11 = vsub.f32 %v674_v60, %v758_v62  ;;  %v1941_v53 = vmov 0  }
 0x1a5   : > { %v733_v21 = vpop.permute.xlu1 %732  ;;  %v900_v59 = vmul.f32 1.7, %v1760_v48  ;;  %v901_v60 = vmul.f32 1.7, %v1781_v56 }
 0x1a6   : > { %v790_v41 = vmax.f32 %v774_v11, 0.0  ;;  %v760_v20 = vmax.f32 %v733_v21, %v1718_v32 }
 0x1a8   : > { %v1824_v7 = vmul.f32 %v790_v41, %v590_v26  ;;  %v776_v47 = vsub.f32 %v676_v8, %v760_v20 }
 0x1a9   : > { %v741_v43 = vpop.permute.xlu1 %740 }
 0x1aa   : > { %v792_v37 = vmax.f32 %v776_v47, 0.0  ;;  %v762_v25 = vmax.f32 %v741_v43, %v1718_v32  ;;  %v902_v43 = vmul.f32 1.7, %v1807_v13  ;;  %v903_v13 = vmul.f32 1.7, %v1788_v63 }
 0x1ac   : > { %v1830_v30 = vmul.f32 %v792_v37, %v592_v49  ;;  %v778_v23 = vsub.f32 %v678_v15, %v762_v25 }
 0x1ae   : > { %v794_v19 = vmax.f32 %v778_v23, 0.0 }
 0x1b0   : > { %v1833_v16 = vmul.f32 %v794_v19, %v594_v39 }
 0x1eb   : > { %v914_v33 = vpop.permute.xlu0 %913 }
 0x1ec   : > { %v995_v58 = vadd.f32 %v1838_v1, %v914_v33  ;;  %v904_v33 = vmul.f32 1.7, %v1816_v3 }
 0x1ee   : > { %v1011_v29 = vmul.f32 0.7, %v995_v58 }
 0x1f0   : > { %vm1027_vm0 = vcmp.gt.f32.partialorder %v895_v55, %v1011_v29 }
 0x1f7   : > { %v919_v32 = vpop.permute.xlu1 %918 }
 0x1f8   : > { %v996_v6 = vadd.f32 %v1838_v1, %v919_v32 }
 0x1fa   : > { %v1012_v5 = vmul.f32 0.7, %v996_v6 }
 0x1fb   : > { %v924_v10 = vpop.permute.xlu1 %923  ;;  %v929_v34 = vpop.permute.xlu0 %928 }
 0x1fc   : > { %vm1028_vm1 = vcmp.gt.f32.partialorder %v896_v57, %v1012_v5  ;;  %v997_v42 = vadd.f32 %v1838_v1, %v924_v10  ;;  %v998_v24 = vadd.f32 %v1838_v1, %v929_v34  ;;  %v906_v57 = vmul.f32 1.7, %v1824_v7 }
 0x1fd   : > { %vm1846_vm2 = vmpackc.low %vm1028_vm1, %vm1027_vm0 }
 0x1fe   : > { %v1013_v51 = vmul.f32 0.7, %v997_v42  ;;  %v1014_v9 = vmul.f32 0.7, %v998_v24 }
 0x1ff   : > { %v934_v45 = vpop.permute.xlu1 %933  ;;  %v939_v14 = vpop.permute.xlu0 %938 }
 0x200   : > { %vm1029_vm3 = vcmp.gt.f32.partialorder %v897_v28, %v1013_v51  ;;  %vm1030_vm4 = vcmp.gt.f32.partialorder %v898_v54, %v1014_v9  ;;  %v999_v52 = vadd.f32 %v1838_v1, %v934_v45  ;;  %v1000_v4 = vadd.f32 %v1838_v1, %v939_v14 }
 0x201   : > { %vm1044_vm5 = vmpackc.low %vm1030_vm4, %vm1029_vm3 }
 0x202   : > { %vm1045_vm6 = vmpackc.even %vm1044_vm5, %vm1846_vm2  ;;  %v1015_v50 = vmul.f32 0.7, %v999_v52  ;;  %v1016_v46 = vmul.f32 0.7, %v1000_v4 }
 0x203   : > { %v1055_v61 = vsel %vm1045_vm6, 16843009, %v1941_v53  ;;  %v944_v17 = vpop.permute.xlu1 %943  ;;  %v949_v12 = vpop.permute.xlu0 %948 }
 0x204   : > { %v1059_v22 = vunpack.c.0.s8 %v1055_v61  ;;  %v1060_v62 = vunpack.c.1.s8 %v1055_v61  ;;  %v1061_v11 = vunpack.c.2.s8 %v1055_v61  ;;  %v1062_v21 = vunpack.c.3.s8 %v1055_v61 }
 0x205   : > { %vm1031_vm7 = vcmp.gt.f32.partialorder %v899_v31, %v1015_v50  ;;  %vm1032_vm8 = vcmp.gt.f32.partialorder %v900_v59, %v1016_v46  ;;  %v1001_v26 = vadd.f32 %v1838_v1, %v944_v17  ;;  %v1002_v35 = vadd.f32 %v1838_v1, %v949_v12 }
 0x206   : > { %v1075_v8 = vpack.c.b16 %v1059_v22, %v1059_v22  ;;  %v1077_v41 = vpack.c.b16 %v1060_v62, %v1060_v62  ;;  %v1079_v20 = vpack.c.b16 %v1061_v11, %v1061_v11  ;;  %v1081_v47 = vpack.c.b16 %v1062_v21, %v1062_v21  ;;  %vm1863_vm9 = vmpackc.low %vm1032_vm8, %vm1031_vm7 }
 0x207   : > { %v1017_v56 = vmul.f32 0.7, %v1001_v26  ;;  %v1018_v49 = vmul.f32 0.7, %v1002_v35  ;;  %v954_v15 = vpop.permute.xlu1 %953  ;;  %v959_v37 = vpop.permute.xlu0 %958  ;;  %v907_v46 = vmul.f32 1.7, %v1809_v18 }
 0x208   : > { %v1076_v25 = vpack.c.b8 %v1075_v8, %v1075_v8  ;;  %v1078_v23 = vpack.c.b8 %v1077_v41, %v1077_v41  ;;  %v1080_v39 = vpack.c.b8 %v1079_v20, %v1079_v20  ;;  %v1082_v19 = vpack.c.b8 %v1081_v47, %v1081_v47 }
 0x209   : > { %vm1033_vm10 = vcmp.gt.f32.partialorder %v901_v60, %v1017_v56  ;;  %vm1034_vm11 = vcmp.gt.f32.partialorder %v902_v43, %v1018_v49  ;;  %v1003_v36 = vadd.f32 %v1838_v1, %v954_v15  ;;  %v1004_v2 = vadd.f32 %v1838_v1, %v959_v37 }
 0x20a   : > { %1107 = vst [vmem:[%s1870_s26] sm:$0x3] %v1076_v25  ;;  %1108 = vst [vmem:[%s1870_s26 + $0x2] sm:$0x3] %v1078_v23  ;;  %v908_v60 = vmul.f32 1.7, %v1830_v30 }
 0x20b   : > { %1109 = vst [vmem:[%s1870_s26 + $0x4] sm:$0x3] %v1080_v39  ;;  %1110 = vst [vmem:[%s1870_s26 + $0x6] sm:$0x3] %v1082_v19  ;;  %v1019_v27 = vmul.f32 0.7, %v1003_v36  ;;  %v964_v32 = vpop.permute.xlu1 %963  ;;  %v969_v29 = vpop.permute.xlu0 %968 }
 0x20c   : > { %vm1047_vm12 = vmpackc.low %vm1034_vm11, %vm1033_vm10  ;;  %v1020_v58 = vmul.f32 0.7, %v1004_v2  ;;  %v1005_v55 = vadd.f32 %v1838_v1, %v964_v32  ;;  %v1006_v5 = vadd.f32 %v1838_v1, %v969_v29  ;;  %v909_v22 = vmul.f32 1.7, %v1818_v40 }
 0x20d   : > { %vm1048_vm13 = vmpackc.even %vm1047_vm12, %vm1863_vm9  ;;  %vm1035_vm14 = vcmp.gt.f32.partialorder %v903_v13, %v1019_v27  ;;  %v910_v56 = vmul.f32 1.7, %v1833_v16 }
 0x20e   : > { %v1056_v6 = vsel %vm1048_vm13, 16843009, %v1941_v53  ;;  %vm1036_vm15 = vcmp.gt.f32.partialorder %v904_v33, %v1020_v58  ;;  %v1021_v42 = vmul.f32 0.7, %v1005_v55  ;;  %v1022_v24 = vmul.f32 0.7, %v1006_v5 }
 0x20f   : > { %v1063_v63 = vunpack.c.0.s8 %v1056_v6  ;;  %v1064_v10 = vunpack.c.1.s8 %v1056_v6  ;;  %v1065_v0 = vunpack.c.2.s8 %v1056_v6  ;;  %v1066_v34 = vunpack.c.3.s8 %v1056_v6  ;;  %vm1888_vm0 = vmpackc.low %vm1036_vm15, %vm1035_vm14  ;;  %v974_v7 = vpop.permute.xlu1 %973  ;;  %v979_v9 = vpop.permute.xlu0 %978 }
 0x210   : > { %vm1037_vm1 = vcmp.gt.f32.partialorder %v905_v44, %v1021_v42  ;;  %vm1038_vm2 = vcmp.gt.f32.partialorder %v906_v57, %v1022_v24  ;;  %v1007_v45 = vadd.f32 %v1838_v1, %v974_v7  ;;  %v1008_v14 = vadd.f32 %v1838_v1, %v979_v9 }
 0x211   : > { %v1083_v3 = vpack.c.b16 %v1063_v63, %v1063_v63  ;;  %v1085_v38 = vpack.c.b16 %v1064_v10, %v1064_v10  ;;  %v1087_v28 = vpack.c.b16 %v1065_v0, %v1065_v0  ;;  %v1089_v51 = vpack.c.b16 %v1066_v34, %v1066_v34  ;;  %vm1050_vm3 = vmpackc.low %vm1038_vm2, %vm1037_vm1 }
 0x212   : > { %vm1051_vm4 = vmpackc.even %vm1050_vm3, %vm1888_vm0  ;;  %v1023_v61 = vmul.f32 0.7, %v1007_v45  ;;  %v1024_v59 = vmul.f32 0.7, %v1008_v14 }
 0x213   : > { %v1084_v52 = vpack.c.b8 %v1083_v3, %v1083_v3  ;;  %v1086_v4 = vpack.c.b8 %v1085_v38, %v1085_v38  ;;  %v1088_v31 = vpack.c.b8 %v1087_v28, %v1087_v28  ;;  %v1090_v50 = vpack.c.b8 %v1089_v51, %v1089_v51  ;;  %v984_v12 = vpop.permute.xlu1 %983  ;;  %v989_v62 = vpop.permute.xlu0 %988 }
 0x214   : > { %v1057_v17 = vsel %vm1051_vm4, 16843009, %v1941_v53  ;;  %vm1039_vm5 = vcmp.gt.f32.partialorder %v907_v46, %v1023_v61  ;;  %vm1040_vm6 = vcmp.gt.f32.partialorder %v908_v60, %v1024_v59  ;;  %v1009_v18 = vadd.f32 %v1838_v1, %v984_v12 }
 0x215   : > { %1111 = vst [vmem:[%s1870_s26 + $0x8] sm:$0x3] %v1084_v52  ;;  %1112 = vst [vmem:[%s1870_s26 + $0xa] sm:$0x3] %v1086_v4  ;;  %v1067_v11 = vunpack.c.0.s8 %v1057_v17  ;;  %v1068_v21 = vunpack.c.1.s8 %v1057_v17  ;;  %v1069_v26 = vunpack.c.2.s8 %v1057_v17  ;;  %v1070_v35 = vunpack.c.3.s8 %v1057_v17 }
 0x216   : > { %1113 = vst [vmem:[%s1870_s26 + $0xc] sm:$0x3] %v1088_v31  ;;  %1114 = vst [vmem:[%s1870_s26 + $0xe] sm:$0x3] %v1090_v50  ;;  %v1010_v8 = vadd.f32 %v1838_v1, %v989_v62  ;;  %v1025_v48 = vmul.f32 0.7, %v1009_v18 }
 0x217   : > { %v1091_v41 = vpack.c.b16 %v1067_v11, %v1067_v11  ;;  %v1093_v20 = vpack.c.b16 %v1068_v21, %v1068_v21  ;;  %v1095_v30 = vpack.c.b16 %v1069_v26, %v1069_v26  ;;  %v1097_v47 = vpack.c.b16 %v1070_v35, %v1070_v35  ;;  %vm1906_vm7 = vmpackc.low %vm1040_vm6, %vm1039_vm5 }
 0x218   : > { %v1026_v43 = vmul.f32 0.7, %v1010_v8  ;;  %vm1041_vm8 = vcmp.gt.f32.partialorder %v909_v22, %v1025_v48 }
 0x219   : > { %v1092_v49 = vpack.c.b8 %v1091_v41, %v1091_v41  ;;  %v1094_v15 = vpack.c.b8 %v1093_v20, %v1093_v20  ;;  %v1096_v37 = vpack.c.b8 %v1095_v30, %v1095_v30  ;;  %v1098_v25 = vpack.c.b8 %v1097_v47, %v1097_v47 }
 0x21a   : > { %vm1042_vm9 = vcmp.gt.f32.partialorder %v910_v56, %v1026_v43 }
 0x21b   : > { %1115 = vst [vmem:[%s1870_s26 + $0x10] sm:$0x3] %v1092_v49  ;;  %1116 = vst [vmem:[%s1870_s26 + $0x12] sm:$0x3] %v1094_v15 }
 0x21c   : > { %1117 = vst [vmem:[%s1870_s26 + $0x14] sm:$0x3] %v1096_v37  ;;  %1118 = vst [vmem:[%s1870_s26 + $0x16] sm:$0x3] %v1098_v25 }
 0x21d   : > { %vm1053_vm10 = vmpackc.low %vm1042_vm9, %vm1041_vm8 }
 0x21e   : > { %vm1054_vm11 = vmpackc.even %vm1053_vm10, %vm1906_vm7 }
 0x21f   : > { %v1058_v16 = vsel %vm1054_vm11, 16843009, %v1941_v53 }
 0x220   : > { %v1071_v1 = vunpack.c.0.s8 %v1058_v16  ;;  %v1072_v23 = vunpack.c.1.s8 %v1058_v16  ;;  %v1073_v39 = vunpack.c.2.s8 %v1058_v16  ;;  %v1074_v19 = vunpack.c.3.s8 %v1058_v16 }
 0x222   : > { %v1099_v36 = vpack.c.b16 %v1071_v1, %v1071_v1  ;;  %v1101_v2 = vpack.c.b16 %v1072_v23, %v1072_v23  ;;  %v1103_v13 = vpack.c.b16 %v1073_v39, %v1073_v39  ;;  %v1105_v44 = vpack.c.b16 %v1074_v19, %v1074_v19 }
 0x224   : > { %v1100_v27 = vpack.c.b8 %v1099_v36, %v1099_v36  ;;  %v1102_v33 = vpack.c.b8 %v1101_v2, %v1101_v2  ;;  %v1104_v58 = vpack.c.b8 %v1103_v13, %v1103_v13  ;;  %v1106_v32 = vpack.c.b8 %v1105_v44, %v1105_v44 }
 0x226   : > { %1119 = vst [vmem:[%s1870_s26 + $0x18] sm:$0x3] %v1100_v27  ;;  %1120 = vst [vmem:[%s1870_s26 + $0x1a] sm:$0x3] %v1102_v33 }
 0x227   : > { %1121 = vst [vmem:[%s1870_s26 + $0x1c] sm:$0x3] %v1104_v58  ;;  %1122 = vst [vmem:[%s1870_s26 + $0x1e] sm:$0x3] %v1106_v32 }
 0x228 PF: > { %s12_s11 = sadd.s32 1, %s1309_s11   ;;  %s1948_s9 = smov %s1305_s10 }
 0x229   : > { %p9_p5 = scmp.ge.s32.totalorder %s12_s11, 4   ;;  %s1949_s10 = smov %s1951_s12 }
 0x22b   :  { %11 = sbr.rel (!%p9_p5) target bundleno = 2 (0x2), region = 61 }

</bundles_post_ra>
